<compile_context>
chip_gen: v6e
topology: v6e:2x2x1
jax: 0.10.0
libtpu: 0.0.40
codegen_flags: <defaults>
</compile_context>

<pallas_src>
import jax
import jax.numpy as jnp
from jax.experimental import pallas as pl
from jax.experimental.pallas import tpu as pltpu

_LANES = 128              # lane-dense last dim (full vreg lane width)
_MAX_BLOCK_ROWS = 8192    # 8192 x 128 f32 = 4 MiB per output block
_MIN_BLOCK_ROWS = 8       # sublane granularity


def _broadcast_scalar_kernel(s_ref, out_ref):
    # s_ref:   SMEM (1,) float32 -- precomputed exp(variance * 10.0)
    # out_ref: VMEM (block_rows, 128) float32 lane-dense output tile
    out_ref[...] = jnp.full(out_ref.shape, s_ref[0], dtype=out_ref.dtype)


def _round_up(a, b):
    return ((a + b - 1) // b) * b


def _broadcast_slab(s, n):
    """Write a lane-dense (padded_rows, 128) slab filled with the scalar s."""
    rows_needed = pl.cdiv(n, _LANES)

    # Aim for >= 2 parallel blocks whenever there is enough work so that
    # dimension_semantics=("parallel",) can shard the row axis across v7x's
    # two TensorCores, but never exceed the VMEM-safe 4 MiB block.
    half_rows = _round_up(pl.cdiv(rows_needed, 2), _MIN_BLOCK_ROWS)
    block_rows = max(_MIN_BLOCK_ROWS, min(_MAX_BLOCK_ROWS, half_rows))
    grid_rows = pl.cdiv(rows_needed, block_rows)
    padded_rows = grid_rows * block_rows

    slab = pl.pallas_call(
        _broadcast_scalar_kernel,
        out_shape=jax.ShapeDtypeStruct((padded_rows, _LANES), jnp.float32),
        grid=(grid_rows,),
        in_specs=[
            pl.BlockSpec(memory_space=pltpu.MemorySpace.SMEM),  # scalar s
        ],
        out_specs=pl.BlockSpec((block_rows, _LANES), lambda i: (i, 0)),
        compiler_params=pltpu.CompilerParams(
            dimension_semantics=("parallel",),
        ),
    )(s)
    return slab, padded_rows


def _single_variance_forward_impl(x, variance):
    n = x.shape[0]
    if n == 0:
        return jnp.zeros((0, 1), jnp.float32)

    # One scalar exp in the wrapper; the kernel is a pure writeback broadcast.
    s = jnp.exp(jnp.asarray(variance, jnp.float32) * 10.0).reshape((1,))

    slab, padded_rows = _broadcast_slab(s, n)
    flat = slab.reshape(padded_rows * _LANES, 1)
    if padded_rows * _LANES == n:
        # Exact fit: pure reshape, no slice copy.
        return flat
    # Padding tail holds the same scalar, so the slice is numerically exact.
    return flat[:n]


@jax.custom_vjp
def single_variance_forward(x, variance):
    """Pallas equivalent of SingleVarianceNetwork.forward.

    x:        [N, ...] array (only its leading dim is used, like len(x)).
    variance: scalar float32 parameter.
    returns:  [N, 1] float32 = ones([N, 1]) * exp(variance * 10.0)
    """
    return _single_variance_forward_impl(x, variance)


def _single_variance_fwd(x, variance):
    variance = jnp.asarray(variance, jnp.float32)
    return _single_variance_forward_impl(x, variance), (x, variance)


def _single_variance_bwd(res, g):
    x, variance = res
    # out = exp(10 * variance) elementwise  =>  d out / d variance = 10 * out.
    dvar = 10.0 * jnp.exp(10.0 * variance) * jnp.sum(g)
    dvar = dvar.astype(variance.dtype).reshape(variance.shape)
    return jnp.zeros_like(x), dvar


single_variance_forward.defvjp(_single_variance_fwd, _single_variance_bwd)


class SingleVarianceNetworkPallas:
    """Thin parameter container mirroring the PyTorch module."""

    def __init__(self, init_val=1.0, use_fixed_variance=False):
        # Deterministic init, same as torch.tensor(init_val).
        # (use_fixed_variance only changes trainability, not the forward math.)
        self.variance = jnp.asarray(init_val, jnp.float32)

    def __call__(self, x):
        return single_variance_forward(x, self.variance)


if __name__ == "__main__":
    key = jax.random.PRNGKey(0)
    # Small input consistent with typical usage: a batch of N points in 3-D.
    N, D = 16, 3
    x = jax.random.normal(key, (N, D), dtype=jnp.float32)

    net = SingleVarianceNetworkPallas(init_val=0.3)
    out = jax.block_until_ready(net(x))

    # Reference check against plain JAX.
    ref = jnp.ones((N, 1), jnp.float32) * jnp.exp(net.variance * 10.0)
    assert out.shape == (N, 1)
    assert jnp.allclose(out, ref, rtol=1e-6, atol=1e-6)

    # Larger N spanning multiple (parallel) grid blocks.
    N2 = 300_000
    out2 = jax.block_until_ready(net(jnp.zeros((N2, D), jnp.float32)))
    assert out2.shape == (N2, 1)
    assert jnp.allclose(out2, jnp.exp(net.variance * 10.0), rtol=1e-6, atol=1e-6)

    # Exact-fit fast path (N divisible by block_rows * 128 -> no slice copy).
    N3 = 8 * 128
    out3 = jax.block_until_ready(net(jnp.zeros((N3, D), jnp.float32)))
    assert out3.shape == (N3, 1)
    assert jnp.allclose(out3, jnp.exp(net.variance * 10.0), rtol=1e-6, atol=1e-6)

    # Gradient of the trainable variance flows through the custom VJP.
    def loss(v):
        return jnp.sum(single_variance_forward(x, v))

    g = jax.block_until_ready(jax.grad(loss)(net.variance))
    expected_g = N * 10.0 * jnp.exp(10.0 * net.variance)
    assert jnp.allclose(g, expected_g, rtol=1e-5, atol=1e-5)

    print("KERNEL_OK")
</pallas_src>

<mosaic_0001>
module attributes {stable_mosaic.version = 11 : i64} {
  func.func @_broadcast_scalar_kernel(%arg0: i32, %arg1: memref<1xf32, #tpu.memory_space<smem>>, %arg2: memref<8x128xf32, #tpu.memory_space<vmem>>) attributes {dimension_semantics = [#tpu.dimension_semantics<parallel>], iteration_bounds = array<i64: 1>, scalar_prefetch = 0 : i64, scratch_operands = 0 : i64, tpu.core_type = #tpu.core_type<tc>, window_params = [{transform_indices = @transform_0, window_bounds = array<i64: 1>}, {transform_indices = @transform_1, window_bounds = array<i64: 8, 128>}]} {
    %c0 = arith.constant 0 : index
    %0 = memref.load %arg1[%c0] : memref<1xf32, #tpu.memory_space<smem>>
    %1 = vector.broadcast %0 : f32 to vector<8x128xf32>
    %c0_0 = arith.constant 0 : index
    %c0_1 = arith.constant 0 : index
    %2 = vector.load %arg2[%c0_0, %c0_1] : memref<8x128xf32, #tpu.memory_space<vmem>>, vector<8x128xf32>
    tpu.vector_store %arg2[%c0_0, %c0_1], %1 {strides = array<i32>} : memref<8x128xf32, #tpu.memory_space<vmem>>, vector<8x128xf32>,
    return
  }
  func.func @transform_0(%arg0: i32) -> i32 {
    %c0_i32 = arith.constant 0 : i32
    %c0_i32_0 = arith.constant 0 : i32
    return %c0_i32 : i32
  }
  func.func @transform_1(%arg0: i32) -> (i32, i32) {
    %c0_i32 = arith.constant 0 : i32
    %c0_i32_0 = arith.constant 0 : i32
    return %arg0, %c0_i32 : i32, i32
  }
}

</mosaic_0001>

<bundles_post_ra>
// kernel: tpu_custom_call.1
= control target key start
LH: loop header
LB: loop body
LE: loop exit
PB: predicated region body
PF: predicated region fallthrough
CT: control target
= control target key end

     0   :  { %s67_s0 = inlined_call_operand.<no memory space> [shape: f32[1], index: 0, kind: input, shape index: {}]   ;;  %s68_s1 = inlined_call_operand.hbm [shape: f32[8,128], index: 1, kind: output, shape index: {}]  }
   0x1   :  { %v11_v0 = vstv %s67_s0 }
   0x2   :  { %7 = vsyncpa [#allocation4], 0  ;;  %12 = vst [vmem:[#allocation3] sm:$0xff] %v11_v0  ;;  %s50_s8 = smov [#allocation3]  }
   0x3   :  { %s19_s9 = sshll.u32 %s50_s8, 4  ;;  %s20_s9 = int_to_ptr.vmem [resolvable:$true] %s19_s9 }
   0x4   :  { %s28_s10 = scalar_lea.vmem %s20_s9, 128  ;;  %p33_p1 = scmp.lt.s32.totalorder %s20_s9, %s20_s9 }
   0x5   :  { %p29_p0 = scmp.ne.s32.totalorder %s20_s9, %s28_s10  ;;  %p34_p2 = scmp.lt.s32.totalorder %s28_s10, %s28_s10 }
   0x7   :  { %p35_p3 = por %p34_p2, %p33_p1 }
   0x9   :  { %p36_p4 = pnand %p35_p3, %p29_p0 }
   0xb   :  { %39 = shalt.err (!%p36_p4)
}
   0xc   :  { %22 = dma.vmem_to_hbm [thread:$0]  %s20_s9, 128, %s68_s1, [#allocation4]  }
   0xd   :  { %48 = dma.done.wait [#allocation4], 128  }
   0xe   :  { %49 = vsyncadd [#allocation4], 4294967168 }
   0xf   :  { %26 = vsyncpa [#allocation4], 1 }

</bundles_post_ra>
